<compile_context>
chip_gen: v7x
topology: tpu7x:2x2x1
jax: 0.10.0
libtpu: 0.0.40
codegen_flags: <defaults>
</compile_context>

<pallas_src>
import functools

import jax
import jax.numpy as jnp
from jax.experimental import pallas as pl
from jax.experimental.pallas import tpu as pltpu


def _round_up(x, m):
    return ((x + m - 1) // m) * m


def _behavior_kernel(xcat_ref, wcat_ref, bcat_ref, w3_ref, b3_ref, out_ref,
                     *, h_pad):
    # Fused fc1|fc2: one MXU pass over 2*h_pad lanes, one EUP sigmoid stream.
    z = jax.nn.sigmoid(
        jnp.dot(xcat_ref[...], wcat_ref[...], preferred_element_type=jnp.float32)
        + bcat_ref[...]
    )
    # Gate at the lane-128 boundary (h_pad is a multiple of 128 -> cheap slice).
    h = z[:, :h_pad] * z[:, h_pad:]
    # fc3 (MXU, lane-dense padded output).
    out_ref[...] = (
        jnp.dot(h.astype(w3_ref.dtype), w3_ref[...],
                preferred_element_type=jnp.float32)
        + b3_ref[...]
    ).astype(out_ref.dtype)


def prepare_params(params, command_scale, *, use_bf16=False):
    """One-time weight preprocessing, hoisted out of the forward hot path.

    Folds command_scale into the fc2 half (exact up to fp reassociation),
    builds the block-diagonal fused fc1|fc2 weight, and zero-pads the hidden
    and action dims to 128 lanes (padded W3 rows/cols are zero -> exact).
    """
    w1, b1, w2, b2, w3, b3 = params
    S, H = w1.shape
    A = w3.shape[1]
    H_pad = _round_up(max(H, 128), 128)
    A_pad = _round_up(max(A, 128), 128)
    K = S + 2

    mat_dtype = jnp.bfloat16 if use_bf16 else jnp.float32

    # Block-diagonal [[W1, 0], [0, command_scale * W2]] -> (S+2, 2*H_pad)
    w_cat = jnp.zeros((K, 2 * H_pad), jnp.float32)
    w_cat = w_cat.at[:S, :H].set(w1)
    w_cat = w_cat.at[S:, H_pad:H_pad + H].set(w2 * jnp.float32(command_scale))
    b_cat = jnp.zeros((1, 2 * H_pad), jnp.float32)
    b_cat = b_cat.at[:, :H].set(b1)
    b_cat = b_cat.at[:, H_pad:H_pad + H].set(b2)

    w3p = jnp.zeros((H_pad, A_pad), jnp.float32).at[:H, :A].set(w3)
    b3p = jnp.zeros((1, A_pad), jnp.float32).at[:, :A].set(b3)

    return dict(
        w_cat=w_cat.astype(mat_dtype),
        b_cat=b_cat,
        w3=w3p.astype(mat_dtype),
        b3=b3p,
        state_size=S,
        hidden_pad=H_pad,
        action_size=A,
        action_pad=A_pad,
    )


def behavior_func_forward(state, desired_return, desired_horizon, prepared,
                          *, tb=256):
    """state: (B, S) f32; desired_return, desired_horizon: (B, 1) f32."""
    w_cat, b_cat = prepared["w_cat"], prepared["b_cat"]
    w3p, b3p = prepared["w3"], prepared["b3"]
    S = prepared["state_size"]
    H_pad = prepared["hidden_pad"]
    A = prepared["action_size"]
    A_pad = prepared["action_pad"]
    K = S + 2

    B = state.shape[0]
    mat_dtype = w_cat.dtype

    # Fused input [state | dr | dh]; command_scale already folded into w_cat.
    x_cat = jnp.concatenate(
        [state, desired_return, desired_horizon], axis=1).astype(mat_dtype)

    # Batch tiling: sublane-aligned tiles; pad B up to a multiple of tb so the
    # grid never collapses to one giant block (padded rows sliced off below).
    tb = max(8, min(tb, _round_up(B, 8)))
    B_pad = _round_up(B, tb)
    if B_pad != B:
        x_cat = jnp.pad(x_cat, ((0, B_pad - B), (0, 0)))
    grid = (B_pad // tb,)

    rep = lambda i: (0, 0)   # weights / biases replicated per grid step
    row = lambda i: (i, 0)   # batch-tiled tensors

    itemsize = jnp.dtype(mat_dtype).itemsize
    cost = pl.CostEstimate(
        flops=2 * B_pad * (K * 2 * H_pad + H_pad * A_pad) + B_pad * H_pad,
        transcendentals=2 * B_pad * H_pad,
        bytes_accessed=(
            itemsize * (B_pad * K + K * 2 * H_pad + H_pad * A_pad)
            + 4 * (2 * H_pad + A_pad + B_pad * A_pad)
        ),
    )

    out_padded = pl.pallas_call(
        functools.partial(_behavior_kernel, h_pad=H_pad),
        out_shape=jax.ShapeDtypeStruct((B_pad, A_pad), jnp.float32),
        grid=grid,
        in_specs=[
            pl.BlockSpec((tb, K), row),            # [state | dr | dh]
            pl.BlockSpec((K, 2 * H_pad), rep),     # fused fc1|fc2 weight
            pl.BlockSpec((1, 2 * H_pad), rep),     # fused bias
            pl.BlockSpec((H_pad, A_pad), rep),     # fc3 weight (padded)
            pl.BlockSpec((1, A_pad), rep),         # fc3 bias (padded)
        ],
        out_specs=pl.BlockSpec((tb, A_pad), row),
        compiler_params=pltpu.CompilerParams(
            dimension_semantics=("parallel",),
            vmem_limit_bytes=32 * 1024 * 1024,
        ),
        cost_estimate=cost,
    )(x_cat, w_cat, b_cat, w3p, b3p)

    # TODO(synk): on v5e with very large B, benchmark an unpadded (B, A)
    # output block (masked vst) against this padded+slice path to avoid the
    # 32x HBM write amplification.
    return out_padded[:B, :A]


def init_params(key, state_size, action_size, hidden_size):
    """Synthetic parameters mirroring nn.Linear shapes.

    torch: fc1 (hidden, state), fc2 (hidden, 2), fc3 (action, hidden).
    Stored transposed as (in, out); biases as (1, out).
    """
    ks = jax.random.split(key, 6)
    w1 = jax.random.normal(ks[0], (state_size, hidden_size), jnp.float32) * 0.1
    b1 = jax.random.normal(ks[1], (1, hidden_size), jnp.float32) * 0.1
    w2 = jax.random.normal(ks[2], (2, hidden_size), jnp.float32) * 0.1
    b2 = jax.random.normal(ks[3], (1, hidden_size), jnp.float32) * 0.1
    w3 = jax.random.normal(ks[4], (hidden_size, action_size), jnp.float32) * 0.1
    b3 = jax.random.normal(ks[5], (1, action_size), jnp.float32) * 0.1
    return (w1, b1, w2, b2, w3, b3)


def reference_forward(state, desired_return, desired_horizon, params,
                      command_scale):
    w1, b1, w2, b2, w3, b3 = params
    x = jax.nn.sigmoid(state @ w1 + b1)
    cmd = jnp.concatenate([desired_return, desired_horizon], axis=1) * command_scale
    y = jax.nn.sigmoid(cmd @ w2 + b2)
    return (x * y) @ w3 + b3


if __name__ == "__main__":
    B, STATE_SIZE, HIDDEN_SIZE, ACTION_SIZE = 128, 16, 32, 4
    COMMAND_SCALE = 0.02

    key = jax.random.PRNGKey(0)
    k_s, k_r, k_h, k_p = jax.random.split(key, 4)

    state = jax.random.normal(k_s, (B, STATE_SIZE), jnp.float32)
    desired_return = jax.random.normal(k_r, (B, 1), jnp.float32)
    desired_horizon = jax.random.normal(k_h, (B, 1), jnp.float32)
    params = init_params(k_p, STATE_SIZE, ACTION_SIZE, HIDDEN_SIZE)

    # One-time preprocessing (hoisted out of the forward path).
    prepared = prepare_params(params, COMMAND_SCALE, use_bf16=False)

    out = behavior_func_forward(state, desired_return, desired_horizon,
                                prepared, tb=256)
    out = jax.block_until_ready(out)

    ref = reference_forward(state, desired_return, desired_horizon, params,
                            COMMAND_SCALE)
    assert out.shape == (B, ACTION_SIZE)
    assert jnp.allclose(out, ref, atol=1e-5, rtol=1e-5)

    print("KERNEL_OK")
</pallas_src>

<mosaic_0001>
module attributes {stable_mosaic.version = 11 : i64} {
  func.func @_behavior_kernel(%arg0: i32, %arg1: memref<128x18xf32, #tpu.memory_space<vmem>>, %arg2: memref<18x256xf32, #tpu.memory_space<vmem>>, %arg3: memref<1x256xf32, #tpu.memory_space<vmem>>, %arg4: memref<128x128xf32, #tpu.memory_space<vmem>>, %arg5: memref<1x128xf32, #tpu.memory_space<vmem>>, %arg6: memref<128x128xf32, #tpu.memory_space<vmem>>) attributes {dimension_semantics = [#tpu.dimension_semantics<parallel>], iteration_bounds = array<i64: 1>, scalar_prefetch = 0 : i64, scratch_operands = 0 : i64, tpu.core_type = #tpu.core_type<tc>, window_params = [{transform_indices = @transform_0, window_bounds = array<i64: 128, 18>}, {pipeline_mode = #tpu.pipeline_mode<synchronous>, transform_indices = @transform_1, window_bounds = array<i64: 18, 256>}, {pipeline_mode = #tpu.pipeline_mode<synchronous>, transform_indices = @transform_2, window_bounds = array<i64: 1, 256>}, {pipeline_mode = #tpu.pipeline_mode<synchronous>, transform_indices = @transform_3, window_bounds = array<i64: 128, 128>}, {pipeline_mode = #tpu.pipeline_mode<synchronous>, transform_indices = @transform_4, window_bounds = array<i64: 1, 128>}, {transform_indices = @transform_5, window_bounds = array<i64: 128, 128>}]} {
    %c0 = arith.constant 0 : index
    %c0_0 = arith.constant 0 : index
    %0 = vector.load %arg1[%c0, %c0_0] : memref<128x18xf32, #tpu.memory_space<vmem>>, vector<128x18xf32>
    %c0_1 = arith.constant 0 : index
    %c0_2 = arith.constant 0 : index
    %1 = vector.load %arg2[%c0_1, %c0_2] : memref<18x256xf32, #tpu.memory_space<vmem>>, vector<18x256xf32>
    %cst = arith.constant dense<0.000000e+00> : vector<128x256xf32>
    %2 = tpu.matmul %0, %1, %cst {dimension_numbers = #tpu.dot_dimension_numbers<[1], [0], [0], [1], [0, 0, 1, 1], [], []>} : vector<128x18xf32>, vector<18x256xf32>, vector<128x256xf32> -> vector<128x256xf32>
    %c0_3 = arith.constant 0 : index
    %c0_4 = arith.constant 0 : index
    %3 = vector.load %arg3[%c0_3, %c0_4] : memref<1x256xf32, #tpu.memory_space<vmem>>, vector<1x256xf32>
    %4 = vector.broadcast %3 : vector<1x256xf32> to vector<128x256xf32>
    %5 = arith.addf %2, %4 : vector<128x256xf32>
    %6 = arith.negf %5 : vector<128x256xf32>
    %7 = math.exp %6 : vector<128x256xf32>
    %cst_5 = arith.constant 1.000000e+00 : f32
    %8 = vector.broadcast %cst_5 : f32 to vector<128x256xf32>
    %9 = arith.addf %8, %7 : vector<128x256xf32>
    %10 = arith.divf %8, %9 : vector<128x256xf32>
    %11 = vector.extract_strided_slice %10 {offsets = [0, 0], sizes = [128, 128], strides = [1, 1]} : vector<128x256xf32> to vector<128x128xf32>
    %12 = vector.extract_strided_slice %10 {offsets = [0, 128], sizes = [128, 128], strides = [1, 1]} : vector<128x256xf32> to vector<128x128xf32>
    %13 = arith.mulf %11, %12 : vector<128x128xf32>
    %c0_6 = arith.constant 0 : index
    %c0_7 = arith.constant 0 : index
    %14 = vector.load %arg4[%c0_6, %c0_7] : memref<128x128xf32, #tpu.memory_space<vmem>>, vector<128x128xf32>
    %cst_8 = arith.constant dense<0.000000e+00> : vector<128x128xf32>
    %15 = tpu.matmul %13, %14, %cst_8 {dimension_numbers = #tpu.dot_dimension_numbers<[1], [0], [0], [1], [0, 0, 1, 1], [], []>} : vector<128x128xf32>, vector<128x128xf32>, vector<128x128xf32> -> vector<128x128xf32>
    %c0_9 = arith.constant 0 : index
    %c0_10 = arith.constant 0 : index
    %16 = vector.load %arg5[%c0_9, %c0_10] : memref<1x128xf32, #tpu.memory_space<vmem>>, vector<1x128xf32>
    %17 = vector.broadcast %16 : vector<1x128xf32> to vector<128x128xf32>
    %18 = arith.addf %15, %17 : vector<128x128xf32>
    %c0_11 = arith.constant 0 : index
    %c0_12 = arith.constant 0 : index
    %19 = vector.load %arg6[%c0_11, %c0_12] : memref<128x128xf32, #tpu.memory_space<vmem>>, vector<128x128xf32>
    tpu.vector_store %arg6[%c0_11, %c0_12], %18 {strides = array<i32>} : memref<128x128xf32, #tpu.memory_space<vmem>>, vector<128x128xf32>,
    return
  }
  func.func @transform_0(%arg0: i32) -> (i32, i32) {
    %c0_i32 = arith.constant 0 : i32
    %c0_i32_0 = arith.constant 0 : i32
    return %arg0, %c0_i32 : i32, i32
  }
  func.func @transform_1(%arg0: i32) -> (i32, i32) {
    %c0_i32 = arith.constant 0 : i32
    %c0_i32_0 = arith.constant 0 : i32
    %c0_i32_1 = arith.constant 0 : i32
    return %c0_i32, %c0_i32_0 : i32, i32
  }
  func.func @transform_2(%arg0: i32) -> (i32, i32) {
    %c0_i32 = arith.constant 0 : i32
    %c0_i32_0 = arith.constant 0 : i32
    %c0_i32_1 = arith.constant 0 : i32
    return %c0_i32, %c0_i32_0 : i32, i32
  }
  func.func @transform_3(%arg0: i32) -> (i32, i32) {
    %c0_i32 = arith.constant 0 : i32
    %c0_i32_0 = arith.constant 0 : i32
    %c0_i32_1 = arith.constant 0 : i32
    return %c0_i32, %c0_i32_0 : i32, i32
  }
  func.func @transform_4(%arg0: i32) -> (i32, i32) {
    %c0_i32 = arith.constant 0 : i32
    %c0_i32_0 = arith.constant 0 : i32
    %c0_i32_1 = arith.constant 0 : i32
    return %c0_i32, %c0_i32_0 : i32, i32
  }
  func.func @transform_5(%arg0: i32) -> (i32, i32) {
    %c0_i32 = arith.constant 0 : i32
    %c0_i32_0 = arith.constant 0 : i32
    return %arg0, %c0_i32 : i32, i32
  }
}

</mosaic_0001>

<bundles_post_ra>
// kernel: tpu_custom_call.1
= control target key start
LH: loop header
LB: loop body
LE: loop exit
PB: predicated region body
PF: predicated region fallthrough
CT: control target
= control target key end

     0   :  { %10 = vsyncpa [#allocation3], 0  ;;  %s1268_s0 = inlined_call_operand.vmem [shape: f32[128,18], index: 0, kind: input, shape index: {}]   ;;  %s1269_s1 = inlined_call_operand.hbm [shape: f32[18,256], index: 1, kind: input, shape index: {}]   ;;  %s1270_s2 = inlined_call_operand.vmem [shape: f32[1,256], index: 2, kind: input, shape index: {}]   ;;  %s1271_s3 = inlined_call_operand.vmem [shape: f32[128,128], index: 3, kind: input, shape index: {}]   ;;  %s1272_s4 = inlined_call_operand.vmem [shape: f32[1,128], index: 4, kind: input, shape index: {}]   ;;  %s1273_s5 = inlined_call_operand.hbm [shape: f32[128,128], index: 5, kind: output, shape index: {}]  }
   0x1   :  { %11 = vsyncpa [#allocation4], 0  ;;  %s1053_s18 = smov [#allocation2]   ;;  %s1005_s22 = scalar_lea.hbm %s1269_s1, 768 }
   0x2   :  { %s19_s19 = sshll.u32 %s1053_s18, 4  ;;  %p1006_p0 = scmp.ne.s32.totalorder %s1269_s1, %s1005_s22  ;;  %s20_s19 = int_to_ptr.vmem [resolvable:$true] %s19_s19 }
   0x3   :  { %p1009_p1 = scmp.lt.u32.totalorder %s1005_s22, %s1269_s1 }
   0x5   :  { %p1011_p2 = pnand %p1009_p1, %p1006_p0 }
   0x7   :  { %1014 = shalt.err (!%p1011_p2)
}
   0x8   :  { %s1015_s27 = scalar_lea.vmem %s20_s19, 768  ;;  %p1020_p4 = scmp.lt.s32.totalorder %s20_s19, %s20_s19 }
   0x9   :  { %p1016_p3 = scmp.ne.s32.totalorder %s20_s19, %s1015_s27  ;;  %p1021_p5 = scmp.lt.s32.totalorder %s1015_s27, %s1015_s27 }
   0xb   :  { %p1022_p6 = por %p1021_p5, %p1020_p4 }
   0xd   :  { %p1023_p7 = pnand %p1022_p6, %p1016_p3 }
   0xf   :  { %1026 = shalt.err (!%p1023_p7)
}
  0x10   :  { %s1054_s28 = smov 256   ;;  %s1055_s29 = smov 16  }
  0x11   :  { %25 = dma.hbm_to_vmem [thread:$0]  %s1269_s1, 768, %s20_s19, [#allocation3], %s1054_s28, %s1054_s28, %s1055_s29  }
  0x12   :  { %1049 = dma.done.wait [#allocation3], 768  }
  0x13   :  { %1050 = vsyncadd [#allocation3], 4294966528  ;;  %v1056_v0 = vmov 0.0   ;;  %v52_v1 = vld [vmem:[#allocation2 + $0x8] sm:$0xff]  ;;  %v54_v2 = vld [vmem:[#allocation2 + $0x18] sm:$0xff]  ;;  %vm118_vm0 = vcmask 1041408   ;;  %v59_v49 = vlaneseq }
  0x14   :  { %189 = vmatprep.mubr.f32.mxu0 %v1056_v0  ;;  %v51_v3 = vld [vmem:[#allocation2] sm:$0xff]  ;;  %v834_v4 = vpack.c.bf16 %v54_v2, %v52_v1  ;;  %v53_v5 = vld [vmem:[#allocation2 + $0x10] sm:$0xff]  ;;  %v56_v7 = vld [vmem:[#allocation2 + $0x28] sm:$0x3]  ;;  %vm69_vm1 = vcmask 146432  }
  0x15   :  { %v836_v6 = vpack.c.bf16 %v53_v5, %v51_v3  ;;  %v55_v8 = vld [vmem:[#allocation2 + $0x20] sm:$0x3]  ;;  %v36_v10 = vld [vmem:[%s1268_s0 + $0x8] sm:$0xff]  ;;  %v37_v11 = vld [vmem:[%s1268_s0 + $0x10] sm:$0xff]  ;;  %v60_v50 = vshrl.u32 %v59_v49, 7 }
  0x16   :  { %835 = vmatprep.subr.bf16.mxu0 %v834_v4  ;;  %v35_v9 = vld [vmem:[%s1268_s0] sm:$0xff]  ;;  %v38_v12 = vld [vmem:[%s1268_s0 + $0x18] sm:$0xff]  ;;  %v40_v14 = vld [vmem:[%s1268_s0 + $0x28] sm:$0xff] }
  0x17   :  { %837 = vmatpush1.bf16.msra.mxu0 %v836_v6  ;;  %v39_v13 = vld [vmem:[%s1268_s0 + $0x20] sm:$0xff]  ;;  %v41_v15 = vld [vmem:[%s1268_s0 + $0x30] sm:$0xff]  ;;  %v42_v16 = vld [vmem:[%s1268_s0 + $0x38] sm:$0xff]  ;;  %v61_v51 = vsub.s32 0, %v60_v50  ;;  %v65_v53 = vsub.s32 1, %v60_v50 }
  0x18   :  { %695 = vmatprep.subr.msk.mxu0 %vm118_vm0, %v56_v7  ;;  %v43_v17 = vld [vmem:[%s1268_s0 + $0x40] sm:$0xff]  ;;  %v44_v18 = vld [vmem:[%s1268_s0 + $0x48] sm:$0xff]  ;;  %v45_v19 = vld [vmem:[%s1268_s0 + $0x50] sm:$0xff] }
  0x19   :  { %v46_v20 = vld [vmem:[%s1268_s0 + $0x58] sm:$0xff]  ;;  %v47_v21 = vld [vmem:[%s1268_s0 + $0x60] sm:$0xff]  ;;  %v48_v22 = vld [vmem:[%s1268_s0 + $0x68] sm:$0xff] }
  0x1a   :  { %v49_v23 = vld [vmem:[%s1268_s0 + $0x70] sm:$0xff]  ;;  %v50_v24 = vld [vmem:[%s1268_s0 + $0x78] sm:$0xff]  ;;  %v494_v25 = vld [vmem:[%s1271_s3] sm:$0xff] }
  0x1b   :  { %696 = vmatpush1.msk.msra.mxu0 %vm118_vm0, %v55_v8  ;;  %v495_v26 = vld [vmem:[%s1271_s3 + $0x8] sm:$0xff]  ;;  %v496_v28 = vld [vmem:[%s1271_s3 + $0x10] sm:$0xff]  ;;  %v497_v29 = vld [vmem:[%s1271_s3 + $0x18] sm:$0xff] }
  0x1c   :  { %697 = vmatmul.mubr.msk.f32.vlgmr.msra.gmra.mrb[0].mxu0 %vm69_vm1, %v35_v9  ;;  %v838_v27 = vpack.c.bf16 %v495_v26, %v494_v25  ;;  %v842_v30 = vpack.c.bf16 %v497_v29, %v496_v28  ;;  %v498_v31 = vld [vmem:[%s1271_s3 + $0x20] sm:$0xff]  ;;  %v499_v32 = vld [vmem:[%s1271_s3 + $0x28] sm:$0xff]  ;;  %v500_v34 = vld [vmem:[%s1271_s3 + $0x30] sm:$0xff] }
  0x1d   :  { %195 = vmatprep.mubr.f32.mxu0 %v1056_v0  ;;  %v846_v33 = vpack.c.bf16 %v499_v32, %v498_v31  ;;  %v501_v35 = vld [vmem:[%s1271_s3 + $0x38] sm:$0xff]  ;;  %v502_v37 = vld [vmem:[%s1271_s3 + $0x40] sm:$0xff]  ;;  %v503_v38 = vld [vmem:[%s1271_s3 + $0x48] sm:$0xff] }
  0x1e   :  { %839 = vmatprep.subr.bf16.mxu1 %v838_v27  ;;  %v850_v36 = vpack.c.bf16 %v501_v35, %v500_v34  ;;  %v854_v39 = vpack.c.bf16 %v503_v38, %v502_v37  ;;  %v504_v40 = vld [vmem:[%s1271_s3 + $0x50] sm:$0xff]  ;;  %v505_v41 = vld [vmem:[%s1271_s3 + $0x58] sm:$0xff]  ;;  %v506_v43 = vld [vmem:[%s1271_s3 + $0x60] sm:$0xff] }
  0x1f   :  { %841 = vmatpush3.bf16.msra.mxu1 %v838_v27  ;;  %v858_v42 = vpack.c.bf16 %v505_v41, %v504_v40  ;;  %v507_v44 = vld [vmem:[%s1271_s3 + $0x68] sm:$0xff]  ;;  %v508_v46 = vld [vmem:[%s1271_s3 + $0x70] sm:$0xff]  ;;  %v509_v47 = vld [vmem:[%s1271_s3 + $0x78] sm:$0xff] }
  0x20   :  { %698 = vmatmul.mubr.msk.f32.gmra.mrb[2].mxu0 %vm69_vm1, %v36_v10  ;;  %843 = vmatprep.subr.bf16.mxu1 %v842_v30  ;;  %v862_v45 = vpack.c.bf16 %v507_v44, %v506_v43  ;;  %v866_v48 = vpack.c.bf16 %v509_v47, %v508_v46  ;;  %v57_v52 = vld [vmem:[%s1270_s2] sm:$0x3] }
  0x21   :  { %201 = vmatprep.mubr.f32.mxu0 %v1056_v0  ;;  %v1217_v54 = vrot.slane %v57_v52, %v61_v51  ;;  %v1219_v55 = vrot.slane %v57_v52, %v65_v53 }
  0x23   :  { %845 = vmatpush3.bf16.msra.mxu1 %v842_v30 }
  0x24   :  { %699 = vmatmul.mubr.msk.f32.gmra.mrb[4].mxu0 %vm69_vm1, %v37_v11  ;;  %847 = vmatprep.subr.bf16.mxu1 %v846_v33 }
  0x25   :  { %207 = vmatprep.mubr.f32.mxu0 %v1056_v0 }
  0x27   :  { %849 = vmatpush3.bf16.msra.mxu1 %v846_v33 }
  0x28   :  { %700 = vmatmul.mubr.msk.f32.gmra.mrb[6].mxu0 %vm69_vm1, %v38_v12  ;;  %851 = vmatprep.subr.bf16.mxu1 %v850_v36 }
  0x29   :  { %213 = vmatprep.mubr.f32.mxu0 %v1056_v0 }
  0x2b   :  { %853 = vmatpush3.bf16.msra.mxu1 %v850_v36 }
  0x2c   :  { %701 = vmatmul.mubr.msk.f32.gmra.mrb[8].mxu0 %vm69_vm1, %v39_v13  ;;  %855 = vmatprep.subr.bf16.mxu1 %v854_v39 }
  0x2d   :  { %219 = vmatprep.mubr.f32.mxu0 %v1056_v0 }
  0x2f   :  { %857 = vmatpush3.bf16.msra.mxu1 %v854_v39 }
  0x30   :  { %702 = vmatmul.mubr.msk.f32.gmra.mrb[10].mxu0 %vm69_vm1, %v40_v14  ;;  %859 = vmatprep.subr.bf16.mxu1 %v858_v42 }
  0x31   :  { %225 = vmatprep.mubr.f32.mxu0 %v1056_v0 }
  0x33   :  { %861 = vmatpush3.bf16.msra.mxu1 %v858_v42 }
  0x34   :  { %703 = vmatmul.mubr.msk.f32.gmra.mrb[12].mxu0 %vm69_vm1, %v41_v15  ;;  %863 = vmatprep.subr.bf16.mxu1 %v862_v45 }
  0x35   :  { %231 = vmatprep.mubr.f32.mxu0 %v1056_v0 }
  0x37   :  { %865 = vmatpush3.bf16.msra.mxu1 %v862_v45 }
  0x38   :  { %704 = vmatmul.mubr.msk.f32.gmra.mrb[14].mxu0 %vm69_vm1, %v42_v16  ;;  %867 = vmatprep.subr.bf16.mxu1 %v866_v48 }
  0x39   :  { %237 = vmatprep.mubr.f32.mxu0 %v1056_v0 }
  0x3b   :  { %869 = vmatpush3.bf16.msra.mxu1 %v866_v48 }
  0x3c   :  { %705 = vmatmul.mubr.msk.f32.gmra.mrb[16].mxu0 %vm69_vm1, %v43_v17 }
  0x3d   :  { %243 = vmatprep.mubr.f32.mxu0 %v1056_v0 }
  0x40   :  { %706 = vmatmul.mubr.msk.f32.gmra.mrb[18].mxu0 %vm69_vm1, %v44_v18 }
  0x41   :  { %249 = vmatprep.mubr.f32.mxu0 %v1056_v0 }
  0x44   :  { %707 = vmatmul.mubr.msk.f32.gmra.mrb[20].mxu0 %vm69_vm1, %v45_v19 }
  0x45   :  { %255 = vmatprep.mubr.f32.mxu0 %v1056_v0 }
  0x48   :  { %708 = vmatmul.mubr.msk.f32.gmra.mrb[22].mxu0 %vm69_vm1, %v46_v20 }
  0x49   :  { %261 = vmatprep.mubr.f32.mxu0 %v1056_v0 }
  0x4c   :  { %709 = vmatmul.mubr.msk.f32.gmra.mrb[24].mxu0 %vm69_vm1, %v47_v21 }
  0x4d   :  { %267 = vmatprep.mubr.f32.mxu0 %v1056_v0 }
  0x50   :  { %710 = vmatmul.mubr.msk.f32.gmra.mrb[26].mxu0 %vm69_vm1, %v48_v22 }
  0x51   :  { %273 = vmatprep.mubr.f32.mxu0 %v1056_v0 }
  0x54   :  { %711 = vmatmul.mubr.msk.f32.gmra.mrb[28].mxu0 %vm69_vm1, %v49_v23 }
  0x55   :  { %279 = vmatprep.mubr.f32.mxu0 %v1056_v0 }
  0x58   :  { %712 = vmatmul.mubr.msk.f32.gmra.mrb[30].mxu0 %vm69_vm1, %v50_v24 }
  0xef   :  { %v191_v56 = vpop.f32.mrb[0].mxu0 }
  0xf0   :  { %v192_v57 = vadd.f32 %v191_v56, %v1217_v54  ;;  %v193_v58 = vpop.f32.mrb[1].mxu0 }
  0xf1   :  { %v194_v59 = vadd.f32 %v193_v58, %v1219_v55 }
  0xf2   :  { %v713_v60 = vmul.f32 -1.442695, %v192_v57 }
  0xf3   :  { %v714_v61 = vmul.f32 -1.442695, %v194_v59  ;;  %v197_v62 = vpop.f32.mrb[2].mxu0 }
  0xf4   :  { %877 = vpow2.f32 %v713_v60  ;;  %v198_v63 = vadd.f32 %v197_v62, %v1217_v54  ;;  %v199_v0 = vpop.f32.mrb[3].mxu0 }
  0xf5   :  { %879 = vpow2.f32 %v714_v61  ;;  %v200_v1 = vadd.f32 %v199_v0, %v1219_v55 }
  0xf6   :  { %v715_v2 = vmul.f32 -1.442695, %v198_v63 }
  0xf7   :  { %v716_v3 = vmul.f32 -1.442695, %v200_v1  ;;  %v203_v4 = vpop.f32.mrb[4].mxu0 }
  0xf8   :  { %881 = vpow2.f32 %v715_v2  ;;  %v204_v5 = vadd.f32 %v203_v4, %v1217_v54  ;;  %v205_v6 = vpop.f32.mrb[5].mxu0 }
  0xf9   :  { %883 = vpow2.f32 %v716_v3  ;;  %v206_v7 = vadd.f32 %v205_v6, %v1219_v55 }
  0xfa   :  { %v717_v8 = vmul.f32 -1.442695, %v204_v5 }
  0xfb   :  { %v718_v9 = vmul.f32 -1.442695, %v206_v7  ;;  %v209_v10 = vpop.f32.mrb[6].mxu0 }
  0xfc   :  { %885 = vpow2.f32 %v717_v8  ;;  %v210_v11 = vadd.f32 %v209_v10, %v1217_v54  ;;  %v211_v12 = vpop.f32.mrb[7].mxu0 }
  0xfd   :  { %887 = vpow2.f32 %v718_v9  ;;  %v212_v13 = vadd.f32 %v211_v12, %v1219_v55 }
  0xfe   :  { %v878_v14 = vpop.eup %877  ;;  %v719_v15 = vmul.f32 -1.442695, %v210_v11 }
  0xff   :  { %v880_v16 = vpop.eup %879  ;;  %v382_v17 = vadd.f32 1.0, %v878_v14  ;;  %v720_v18 = vmul.f32 -1.442695, %v212_v13  ;;  %v215_v19 = vpop.f32.mrb[8].mxu0 }
 0x100   :  { %v383_v20 = vadd.f32 1.0, %v880_v16  ;;  %889 = vpow2.f32 %v719_v15  ;;  %v216_v21 = vadd.f32 %v215_v19, %v1217_v54  ;;  %v217_v22 = vpop.f32.mrb[9].mxu0 }
 0x101   :  { %891 = vrcp.f32 %v382_v17  ;;  %v218_v23 = vadd.f32 %v217_v22, %v1219_v55 }
 0x102   :  { %v882_v24 = vpop.eup %881  ;;  %893 = vrcp.f32 %v383_v20  ;;  %v721_v25 = vmul.f32 -1.442695, %v216_v21 }
 0x103   :  { %v884_v26 = vpop.eup %883  ;;  %v384_v27 = vadd.f32 1.0, %v882_v24  ;;  %895 = vpow2.f32 %v720_v18  ;;  %v722_v28 = vmul.f32 -1.442695, %v218_v23  ;;  %v221_v29 = vpop.f32.mrb[10].mxu0 }
 0x104   :  { %v385_v30 = vadd.f32 1.0, %v884_v26  ;;  %897 = vpow2.f32 %v721_v25  ;;  %v222_v31 = vadd.f32 %v221_v29, %v1217_v54  ;;  %v223_v32 = vpop.f32.mrb[11].mxu0 }
 0x105   :  { %899 = vrcp.f32 %v384_v27  ;;  %v224_v33 = vadd.f32 %v223_v32, %v1219_v55 }
 0x106   :  { %v886_v34 = vpop.eup %885  ;;  %901 = vrcp.f32 %v385_v30  ;;  %v723_v35 = vmul.f32 -1.442695, %v222_v31 }
 0x107   :  { %v888_v36 = vpop.eup %887  ;;  %v386_v37 = vadd.f32 1.0, %v886_v34  ;;  %903 = vpow2.f32 %v722_v28  ;;  %v724_v38 = vmul.f32 -1.442695, %v224_v33  ;;  %v227_v39 = vpop.f32.mrb[12].mxu0 }
 0x108   :  { %v387_v40 = vadd.f32 1.0, %v888_v36  ;;  %905 = vpow2.f32 %v723_v35  ;;  %v228_v41 = vadd.f32 %v227_v39, %v1217_v54  ;;  %v229_v42 = vpop.f32.mrb[13].mxu0 }
 0x109   :  { %907 = vrcp.f32 %v386_v37  ;;  %v230_v43 = vadd.f32 %v229_v42, %v1219_v55 }
 0x10a   :  { %v890_v44 = vpop.eup %889  ;;  %909 = vrcp.f32 %v387_v40  ;;  %v725_v45 = vmul.f32 -1.442695, %v228_v41 }
 0x10b   :  { %v892_v46 = vpop.eup %891  ;;  %v388_v47 = vadd.f32 1.0, %v890_v44  ;;  %911 = vpow2.f32 %v724_v38  ;;  %v726_v48 = vmul.f32 -1.442695, %v230_v43  ;;  %v233_v49 = vpop.f32.mrb[14].mxu0 }
 0x10c   :  { %v894_v50 = vpop.eup %893  ;;  %913 = vpow2.f32 %v725_v45  ;;  %v234_v51 = vadd.f32 %v233_v49, %v1217_v54  ;;  %v235_v52 = vpop.f32.mrb[15].mxu0 }
 0x10d   :  { %v896_v53 = vpop.eup %895  ;;  %915 = vrcp.f32 %v388_v47  ;;  %v236_v56 = vadd.f32 %v235_v52, %v1219_v55  ;;  %v478_v57 = vmul.f32 %v894_v50, %v892_v46 }
 0x10e   :  { %v898_v58 = vpop.eup %897  ;;  %v389_v59 = vadd.f32 1.0, %v896_v53  ;;  %917 = vpow2.f32 %v726_v48  ;;  %v727_v60 = vmul.f32 -1.442695, %v234_v51 }
 0x10f   :  { %v900_v61 = vpop.eup %899  ;;  %v390_v62 = vadd.f32 1.0, %v898_v58  ;;  %v728_v63 = vmul.f32 -1.442695, %v236_v56  ;;  %v239_v0 = vpop.f32.mrb[16].mxu0  ;;  %810 = vmatprep.mubr.f32.mxu1 %v478_v57 }
 0x110   :  { %v902_v1 = vpop.eup %901  ;;  %919 = vrcp.f32 %v389_v59  ;;  %v240_v2 = vadd.f32 %v239_v0, %v1217_v54  ;;  %v241_v3 = vpop.f32.mrb[17].mxu0 }
 0x111   :  { %v904_v4 = vpop.eup %903  ;;  %921 = vrcp.f32 %v390_v62  ;;  %v242_v5 = vadd.f32 %v241_v3, %v1219_v55  ;;  %v479_v6 = vmul.f32 %v902_v1, %v900_v61 }
 0x112   :  { %v906_v7 = vpop.eup %905  ;;  %v391_v8 = vadd.f32 1.0, %v904_v4  ;;  %923 = vpow2.f32 %v727_v60  ;;  %v729_v9 = vmul.f32 -1.442695, %v240_v2 }
 0x113   :  { %v908_v10 = vpop.eup %907  ;;  %v392_v11 = vadd.f32 1.0, %v906_v7  ;;  %925 = vpow2.f32 %v728_v63  ;;  %v730_v12 = vmul.f32 -1.442695, %v242_v5  ;;  %v245_v13 = vpop.f32.mrb[18].mxu0  ;;  %811 = vmatmul.mubr.f32.vlgmr.msra.gmra.mrb[0].mxu1 %v479_v6 }
 0x114   :  { %v910_v14 = vpop.eup %909  ;;  %927 = vrcp.f32 %v391_v8  ;;  %v246_v15 = vadd.f32 %v245_v13, %v1217_v54  ;;  %v247_v16 = vpop.f32.mrb[19].mxu0 }
 0x115   :  { %v912_v17 = vpop.eup %911  ;;  %929 = vrcp.f32 %v392_v11  ;;  %v248_v18 = vadd.f32 %v247_v16, %v1219_v55  ;;  %v480_v19 = vmul.f32 %v910_v14, %v908_v10 }
 0x116   :  { %v914_v20 = vpop.eup %913  ;;  %v393_v21 = vadd.f32 1.0, %v912_v17  ;;  %931 = vpow2.f32 %v729_v9  ;;  %v731_v22 = vmul.f32 -1.442695, %v246_v15 }
 0x117   :  { %v916_v23 = vpop.eup %915  ;;  %v394_v24 = vadd.f32 1.0, %v914_v20  ;;  %933 = vpow2.f32 %v730_v12  ;;  %v251_v25 = vpop.f32.mrb[20].mxu0  ;;  %813 = vmatprep.mubr.f32.mxu1 %v480_v19  ;;  %v732_v27 = vmul.f32 -1.442695, %v248_v18 }
 0x118   :  { %v918_v26 = vpop.eup %917  ;;  %935 = vrcp.f32 %v393_v21  ;;  %v252_v28 = vadd.f32 %v251_v25, %v1217_v54  ;;  %v253_v29 = vpop.f32.mrb[21].mxu0 }
 0x119   :  { %937 = vrcp.f32 %v394_v24  ;;  %v395_v30 = vadd.f32 1.0, %v918_v26  ;;  %v254_v31 = vadd.f32 %v253_v29, %v1219_v55 }
 0x11a   :  { %v920_v32 = vpop.eup %919  ;;  %939 = vpow2.f32 %v731_v22  ;;  %v733_v33 = vmul.f32 -1.442695, %v252_v28 }
 0x11b   :  { %v922_v34 = vpop.eup %921  ;;  %941 = vrcp.f32 %v395_v30  ;;  %v734_v35 = vmul.f32 -1.442695, %v254_v31  ;;  %v257_v36 = vpop.f32.mrb[22].mxu0  ;;  %v481_v37 = vmul.f32 %v920_v32, %v916_v23 }
 0x11c   :  { %v924_v38 = vpop.eup %923  ;;  %943 = vpow2.f32 %v732_v27  ;;  %v258_v39 = vadd.f32 %v257_v36, %v1217_v54  ;;  %v259_v40 = vpop.f32.mrb[23].mxu0 }
 0x11d   :  { %v926_v41 = vpop.eup %925  ;;  %v396_v42 = vadd.f32 1.0, %v924_v38  ;;  %945 = vpow2.f32 %v733_v33  ;;  %814 = vmatmul.mubr.f32.gmra.mrb[2].mxu1 %v481_v37  ;;  %v260_v43 = vadd.f32 %v259_v40, %v1219_v55 }
 0x11e   :  { %v928_v44 = vpop.eup %927  ;;  %v397_v45 = vadd.f32 1.0, %v926_v41  ;;  %947 = vpow2.f32 %v734_v35  ;;  %v735_v46 = vmul.f32 -1.442695, %v258_v39 }
 0x11f   :  { %v930_v47 = vpop.eup %929  ;;  %949 = vrcp.f32 %v396_v42  ;;  %v736_v48 = vmul.f32 -1.442695, %v260_v43  ;;  %v263_v49 = vpop.f32.mrb[24].mxu0  ;;  %v482_v50 = vmul.f32 %v928_v44, %v922_v34 }
 0x120   :  { %v932_v51 = vpop.eup %931  ;;  %951 = vrcp.f32 %v397_v45  ;;  %v264_v52 = vadd.f32 %v263_v49, %v1217_v54  ;;  %v265_v53 = vpop.f32.mrb[25].mxu0 }
 0x121   :  { %v934_v56 = vpop.eup %933  ;;  %v398_v57 = vadd.f32 1.0, %v932_v51  ;;  %953 = vpow2.f32 %v735_v46  ;;  %816 = vmatprep.mubr.f32.mxu1 %v482_v50  ;;  %v266_v58 = vadd.f32 %v265_v53, %v1219_v55 }
 0x122   :  { %v936_v59 = vpop.eup %935  ;;  %v399_v60 = vadd.f32 1.0, %v934_v56  ;;  %955 = vpow2.f32 %v736_v48  ;;  %v737_v61 = vmul.f32 -1.442695, %v264_v52 }
 0x123   :  { %v938_v62 = vpop.eup %937  ;;  %957 = vrcp.f32 %v398_v57  ;;  %v738_v63 = vmul.f32 -1.442695, %v266_v58  ;;  %v269_v0 = vpop.f32.mrb[26].mxu0  ;;  %v483_v1 = vmul.f32 %v936_v59, %v930_v47 }
 0x124   :  { %v940_v2 = vpop.eup %939  ;;  %959 = vrcp.f32 %v399_v60  ;;  %v270_v3 = vadd.f32 %v269_v0, %v1217_v54  ;;  %v271_v4 = vpop.f32.mrb[27].mxu0 }
 0x125   :  { %v942_v5 = vpop.eup %941  ;;  %v400_v6 = vadd.f32 1.0, %v940_v2  ;;  %961 = vpow2.f32 %v737_v61  ;;  %817 = vmatmul.mubr.f32.gmra.mrb[4].mxu1 %v483_v1  ;;  %v272_v7 = vadd.f32 %v271_v4, %v1219_v55 }
 0x126   :  { %v944_v8 = vpop.eup %943  ;;  %963 = vpow2.f32 %v738_v63  ;;  %v739_v9 = vmul.f32 -1.442695, %v270_v3  ;;  %v484_v10 = vmul.f32 %v942_v5, %v938_v62 }
 0x127   :  { %v946_v11 = vpop.eup %945  ;;  %965 = vrcp.f32 %v400_v6  ;;  %v401_v12 = vadd.f32 1.0, %v944_v8  ;;  %v275_v13 = vpop.f32.mrb[28].mxu0  ;;  %v740_v16 = vmul.f32 -1.442695, %v272_v7 }
 0x128   :  { %v948_v14 = vpop.eup %947  ;;  %v402_v15 = vadd.f32 1.0, %v946_v11  ;;  %967 = vpow2.f32 %v739_v9  ;;  %v276_v17 = vadd.f32 %v275_v13, %v1217_v54  ;;  %819 = vmatprep.mubr.f32.mxu1 %v484_v10  ;;  %v277_v18 = vpop.f32.mrb[29].mxu0 }
 0x129   :  { %v950_v19 = vpop.eup %949  ;;  %969 = vrcp.f32 %v401_v12  ;;  %v403_v20 = vadd.f32 1.0, %v948_v14  ;;  %v278_v21 = vadd.f32 %v277_v18, %v1219_v55  ;;  %v745_v12 = vld [vmem:[%s1272_s4] ss:$0 sm:$0xff]  ;;  %s1057_s4 = smov [#allocation5]  }
 0x12a   :  { %v952_v22 = vpop.eup %951  ;;  %971 = vrcp.f32 %v402_v15  ;;  %v741_v23 = vmul.f32 -1.442695, %v276_v17  ;;  %s683_s19 = sshll.u32 %s1057_s4, 4  ;;  %s684_s19 = int_to_ptr.vmem [resolvable:$true] %s683_s19 }
 0x12b   :  { %v954_v24 = vpop.eup %953  ;;  %973 = vrcp.f32 %v403_v20  ;;  %v281_v25 = vpop.f32.mrb[30].mxu0  ;;  %v485_v26 = vmul.f32 %v952_v22, %v950_v19  ;;  %v742_v29 = vmul.f32 -1.442695, %v278_v21  ;;  %s1027_s0 = scalar_lea.vmem %s684_s19, 2048  ;;  %p1032_p9 = scmp.lt.s32.totalorder %s684_s19, %s684_s19 }
 0x12c   :  { %v956_v27 = vpop.eup %955  ;;  %v404_v28 = vadd.f32 1.0, %v954_v24  ;;  %975 = vpow2.f32 %v740_v16  ;;  %v282_v30 = vadd.f32 %v281_v25, %v1217_v54  ;;  %v283_v31 = vpop.f32.mrb[31].mxu0  ;;  %p1028_p8 = scmp.ne.s32.totalorder %s684_s19, %s1027_s0  ;;  %p1033_p10 = scmp.lt.s32.totalorder %s1027_s0, %s1027_s0 }
 0x12d   :  { %v958_v32 = vpop.eup %957  ;;  %v405_v33 = vadd.f32 1.0, %v956_v27  ;;  %977 = vpow2.f32 %v741_v23  ;;  %820 = vmatmul.mubr.f32.gmra.mrb[6].mxu1 %v485_v26  ;;  %v284_v34 = vadd.f32 %v283_v31, %v1219_v55 }
 0x12e   :  { %v960_v35 = vpop.eup %959  ;;  %979 = vrcp.f32 %v404_v28  ;;  %v743_v36 = vmul.f32 -1.442695, %v282_v30  ;;  %p1034_p11 = por %p1033_p10, %p1032_p9 }
 0x12f   :  { %v962_v37 = vpop.eup %961  ;;  %981 = vrcp.f32 %v405_v33  ;;  %v486_v38 = vmul.f32 %v960_v35, %v958_v32  ;;  %v744_v41 = vmul.f32 -1.442695, %v284_v34 }
 0x130   :  { %v964_v39 = vpop.eup %963  ;;  %v406_v40 = vadd.f32 1.0, %v962_v37  ;;  %983 = vpow2.f32 %v742_v29  ;;  %p1035_p12 = pnand %p1034_p11, %p1028_p8 }
 0x131   :  { %v966_v42 = vpop.eup %965  ;;  %v407_v43 = vadd.f32 1.0, %v964_v39  ;;  %985 = vpow2.f32 %v743_v36  ;;  %822 = vmatprep.mubr.f32.mxu1 %v486_v38 }
 0x132   :  { %v968_v54 = vpop.eup %967  ;;  %987 = vrcp.f32 %v406_v40 }
 0x133   :  { %v970_v44 = vpop.eup %969  ;;  %989 = vrcp.f32 %v407_v43  ;;  %v408_v45 = vadd.f32 1.0, %v968_v54 }
 0x134   :  { %v972_v55 = vpop.eup %971  ;;  %991 = vpow2.f32 %v744_v41  ;;  %v487_v46 = vmul.f32 %v970_v44, %v966_v42 }
 0x135   :  { %v974_v47 = vpop.eup %973  ;;  %993 = vrcp.f32 %v408_v45 }
 0x136   :  { %v976_v48 = vpop.eup %975  ;;  %823 = vmatmul.mubr.f32.gmra.mrb[8].mxu1 %v487_v46  ;;  %v488_v49 = vmul.f32 %v974_v47, %v972_v55 }
 0x137   :  { %v978_v50 = vpop.eup %977  ;;  %v409_v51 = vadd.f32 1.0, %v976_v48 }
 0x138   :  { %v980_v52 = vpop.eup %979  ;;  %v410_v53 = vadd.f32 1.0, %v978_v50  ;;  %825 = vmatprep.mubr.f32.mxu1 %v488_v49 }
 0x139   :  { %v982_v56 = vpop.eup %981  ;;  %995 = vrcp.f32 %v409_v51 }
 0x13a   :  { %v984_v57 = vpop.eup %983  ;;  %v489_v58 = vmul.f32 %v982_v56, %v980_v52  ;;  %997 = vrcp.f32 %v410_v53 }
 0x13b   :  { %v986_v59 = vpop.eup %985  ;;  %v411_v60 = vadd.f32 1.0, %v984_v57 }
 0x13c   :  { %v988_v61 = vpop.eup %987  ;;  %v412_v62 = vadd.f32 1.0, %v986_v59  ;;  %826 = vmatmul.mubr.f32.gmra.mrb[10].mxu1 %v489_v58 }
 0x13d   :  { %v990_v63 = vpop.eup %989  ;;  %999 = vrcp.f32 %v411_v60 }
 0x13e   :  { %v992_v0 = vpop.eup %991  ;;  %v490_v1 = vmul.f32 %v990_v63, %v988_v61  ;;  %1001 = vrcp.f32 %v412_v62 }
 0x13f   :  { %v413_v2 = vadd.f32 1.0, %v992_v0  ;;  %v994_v3 = vpop.eup %993 }
 0x140   :  { %828 = vmatprep.mubr.f32.mxu1 %v490_v1 }
 0x141   :  { %1003 = vrcp.f32 %v413_v2 }
 0x143   :  { %v996_v4 = vpop.eup %995 }
 0x144   :  { %v491_v5 = vmul.f32 %v996_v4, %v994_v3  ;;  %v998_v6 = vpop.eup %997 }
 0x146   :  { %829 = vmatmul.mubr.f32.gmra.mrb[12].mxu1 %v491_v5 }
 0x147   :  { %v1000_v7 = vpop.eup %999 }
 0x148   :  { %v492_v8 = vmul.f32 %v1000_v7, %v998_v6  ;;  %v1002_v9 = vpop.eup %1001 }
 0x14a   :  { %831 = vmatprep.mubr.f32.mxu1 %v492_v8 }
 0x14b   :  { %v1004_v10 = vpop.eup %1003 }
 0x14c   :  { %v493_v11 = vmul.f32 %v1004_v10, %v1002_v9 }
 0x14e   :  { %832 = vmatmul.mubr.f32.gmra.mrb[14].mxu1 %v493_v11 }
 0x1e6   :  { %v812_v13 = vpop.f32.mrb[0].mxu1 }
 0x1e7   :  { %v589_v14 = vadd.f32 %v812_v13, %v745_v12  ;;  %v583_v15 = vpop.f32.mrb[1].mxu1 }
 0x1e8   :  { %v584_v16 = vadd.f32 %v745_v12, %v583_v15 }
 0x1e9   :  { %663 = vst [vmem:[#allocation5 + $0x8] sm:$0xff] %v589_v14 }
 0x1ea   :  { %662 = vst [vmem:[#allocation5] sm:$0xff] %v584_v16 }
 0x1f0   :  { %v815_v17 = vpop.f32.mrb[2].mxu1 }
 0x1f1   :  { %v599_v18 = vadd.f32 %v815_v17, %v745_v12  ;;  %v593_v19 = vpop.f32.mrb[3].mxu1 }
 0x1f2   :  { %v594_v20 = vadd.f32 %v745_v12, %v593_v19 }
 0x1f3   :  { %665 = vst [vmem:[#allocation5 + $0x18] sm:$0xff] %v599_v18 }
 0x1f4   :  { %664 = vst [vmem:[#allocation5 + $0x10] sm:$0xff] %v594_v20 }
 0x1f8   :  { %v818_v21 = vpop.f32.mrb[4].mxu1 }
 0x1f9   :  { %v609_v22 = vadd.f32 %v818_v21, %v745_v12  ;;  %v603_v23 = vpop.f32.mrb[5].mxu1 }
 0x1fa   :  { %v604_v24 = vadd.f32 %v745_v12, %v603_v23 }
 0x1fb   :  { %667 = vst [vmem:[#allocation5 + $0x28] sm:$0xff] %v609_v22 }
 0x1fc   :  { %666 = vst [vmem:[#allocation5 + $0x20] sm:$0xff] %v604_v24 }
 0x200   :  { %v821_v25 = vpop.f32.mrb[6].mxu1 }
 0x201   :  { %v619_v26 = vadd.f32 %v821_v25, %v745_v12  ;;  %v613_v27 = vpop.f32.mrb[7].mxu1 }
 0x202   :  { %v614_v28 = vadd.f32 %v745_v12, %v613_v27 }
 0x203   :  { %669 = vst [vmem:[#allocation5 + $0x38] sm:$0xff] %v619_v26 }
 0x204   :  { %668 = vst [vmem:[#allocation5 + $0x30] sm:$0xff] %v614_v28 }
 0x209   :  { %v824_v29 = vpop.f32.mrb[8].mxu1 }
 0x20a   :  { %v629_v30 = vadd.f32 %v824_v29, %v745_v12  ;;  %v623_v31 = vpop.f32.mrb[9].mxu1 }
 0x20b   :  { %v624_v32 = vadd.f32 %v745_v12, %v623_v31 }
 0x20c   :  { %671 = vst [vmem:[#allocation5 + $0x48] sm:$0xff] %v629_v30 }
 0x20d   :  { %670 = vst [vmem:[#allocation5 + $0x40] sm:$0xff] %v624_v32 }
 0x20f   :  { %v827_v33 = vpop.f32.mrb[10].mxu1 }
 0x210   :  { %v639_v34 = vadd.f32 %v827_v33, %v745_v12  ;;  %v633_v35 = vpop.f32.mrb[11].mxu1 }
 0x211   :  { %v634_v36 = vadd.f32 %v745_v12, %v633_v35 }
 0x212   :  { %673 = vst [vmem:[#allocation5 + $0x58] sm:$0xff] %v639_v34 }
 0x213   :  { %672 = vst [vmem:[#allocation5 + $0x50] sm:$0xff] %v634_v36 }
 0x219   :  { %v830_v37 = vpop.f32.mrb[12].mxu1 }
 0x21a   :  { %v649_v38 = vadd.f32 %v830_v37, %v745_v12  ;;  %v643_v39 = vpop.f32.mrb[13].mxu1 }
 0x21b   :  { %v644_v40 = vadd.f32 %v745_v12, %v643_v39 }
 0x21c   :  { %675 = vst [vmem:[#allocation5 + $0x68] sm:$0xff] %v649_v38 }
 0x21d   :  { %674 = vst [vmem:[#allocation5 + $0x60] sm:$0xff] %v644_v40 }
 0x221   :  { %v833_v41 = vpop.f32.mrb[14].mxu1 }
 0x222   :  { %v659_v42 = vadd.f32 %v833_v41, %v745_v12  ;;  %v653_v43 = vpop.f32.mrb[15].mxu1 }
 0x223   :  { %v654_v54 = vadd.f32 %v745_v12, %v653_v43 }
 0x224   :  { %677 = vst [vmem:[#allocation5 + $0x78] sm:$0xff] %v659_v42 }
 0x225   :  { %676 = vst [vmem:[#allocation5 + $0x70] sm:$0xff] %v654_v54 }
 0x226   :  { %1038 = shalt.err (!%p1035_p12)
}
 0x227   :  { %s1039_s22 = scalar_lea.hbm %s1273_s5, 2048 }
 0x228   :  { %p1040_p13 = scmp.ne.s32.totalorder %s1273_s5, %s1039_s22  ;;  %p1043_p0 = scmp.lt.u32.totalorder %s1039_s22, %s1273_s5 }
 0x22a   :  { %p1045_p1 = pnand %p1043_p0, %p1040_p13 }
 0x22c   :  { %1048 = shalt.err (!%p1045_p1)
}
 0x22d   :  { %s1058_s27 = smov 128   ;;  %s1059_s28 = smov 8  }
 0x22e   :  { %689 = dma.vmem_to_hbm [thread:$0]  %s684_s19, 2048, %s1273_s5, [#allocation4], %s1058_s27, %s1058_s27, %s1059_s28  }
 0x22f   :  { %1051 = dma.done.wait [#allocation4], 2048  }
 0x230   :  { %1052 = vsyncadd [#allocation4], 4294965248 }
 0x231   :  { %693 = vsyncpa [#allocation3], 1 }
 0x232   :  { %694 = vsyncpa [#allocation4], 1 }

</bundles_post_ra>
